<compile_context>
chip_gen: v6e
topology: v6e:2x2x1
jax: 0.10.0
libtpu: 0.0.40
codegen_flags: <defaults>
</compile_context>

<pallas_src>
import functools
import math

import jax
import jax.numpy as jnp
from jax import lax
from jax.experimental import pallas as pl
from jax.experimental.pallas import tpu as pltpu


# --------------------------------------------------------------------------
# Pass 1: per-sample cross entropy + pt, tiled/pipelined over the batch axis.
# --------------------------------------------------------------------------
def _ce_kernel(pred_ref, labels_ref, ce_ref, pt_ref):
    """pred: (TILE_N, C) logits; labels: (TILE_N, 1) int32 class ids."""
    pred = pred_ref[...].astype(jnp.float32)   # upcast in-kernel (bf16 stays bf16 on the wire)
    labels = labels_ref[...]                   # (TILE_N, 1) int32

    m = jnp.max(pred, axis=-1, keepdims=True)              # (TILE_N, 1)
    ex = jnp.exp(pred - m)                                  # (TILE_N, C)
    sumexp = jnp.sum(ex, axis=-1, keepdims=True)            # (TILE_N, 1)

    # one-hot built in-register from an iota compare (no (N, C) one-hot input)
    hot = lax.broadcasted_iota(jnp.int32, pred.shape, 1) == labels
    picked = jnp.sum(jnp.where(hot, pred, 0.0), axis=-1, keepdims=True)   # pred[label]

    ce_ref[...] = (m + jnp.log(sumexp)) - picked
    # pt = exp(-ce) via one tiny EUP exp; no second (TILE_N, C) masked sum.
    pt_ref[...] = jnp.exp(picked - m) / sumexp


# --------------------------------------------------------------------------
# Pass 2: exact 0.7-quantile (order statistics) + discounted focal mean.
# Inputs: ce_row/pt_row lane-major (1, N_PAD), ce_col column (N_PAD, 1).
# --------------------------------------------------------------------------
def _quantile_loss_kernel(ce_row_ref, pt_row_ref, ce_col_ref, out_ref, *,
                          n, lo, hi, frac, gamma, alpha):
    n_pad = ce_row_ref.shape[-1]
    ce_row = ce_row_ref[...]                   # (1, n_pad) lane-major
    pt_row = pt_row_ref[...]                   # (1, n_pad) lane-major
    ce_col = ce_col_ref[...]                   # (n_pad, 1) column copy

    big = jnp.float32(3.0e38)
    lane = lax.broadcasted_iota(jnp.int32, (1, n_pad), 1)
    valid = lane < n
    ce_row_s = jnp.where(valid, ce_row, big)   # padded lanes pushed to the top
    sub = lax.broadcasted_iota(jnp.int32, (n_pad, 1), 0)
    ce_col_s = jnp.where(sub < n, ce_col, big)

    # cmp[j, i] = (ce[j] <= ce[i]); j on sublanes, i on lanes.
    # Built from the row/column broadcasts directly -> no NxN transpose, no
    # triangular tie mask, no NxN int32 iotas.  Comparisons stay in f32.
    cmp = ce_col_s <= ce_row_s                               # (n_pad, n_pad) bool

    if n_pad >= 256:
        # MXU count reduction: exact 0/1 values cast to bf16, f32 accumulator.
        cmp_bf = jnp.where(cmp, jnp.bfloat16(1.0), jnp.bfloat16(0.0))
        ones = jnp.ones((16, n_pad), jnp.bfloat16)
        cnt = jnp.dot(ones, cmp_bf, preferred_element_type=jnp.float32)  # (16, n_pad)
        c_leq = cnt[0:1, :]                                  # (1, n_pad) lane-major counts
    else:
        # tiny batches: a vreg-level sublane sum beats a padded MXU pass
        c_leq = jnp.sum(jnp.where(cmp, 1.0, 0.0), axis=0, keepdims=True)

    # k-th order statistic s[k] = min{ce[i] : c_leq[i] > k}  (exact, handles ties)
    v_lo = jnp.min(jnp.where(c_leq > lo, ce_row_s, big))
    v_hi = jnp.min(jnp.where(c_leq > hi, ce_row_s, big))
    threshold = v_lo + frac * (v_hi - v_lo)          # torch 'linear' interpolation

    # discounted focal mean — full-lane-width VPU work on (1, n_pad)
    w = 1.0 - pt_row
    if gamma == 2.0:
        focal = alpha * w * w                        # VPU only: no pow -> exp/log
    else:
        focal = alpha * jnp.where(w > 0.0, jnp.maximum(w, 1e-30) ** gamma, 0.0)
    discount = 1.0 - 0.5 * (ce_row > threshold).astype(jnp.float32)
    terms = jnp.where(valid, focal * ce_row * discount, 0.0)
    out_ref[0, 0] = jnp.sum(terms) * jnp.float32(1.0 / n)


# --------------------------------------------------------------------------
# Wrapper
# --------------------------------------------------------------------------
def _round_up(x, m):
    return ((x + m - 1) // m) * m


def _physical_vmem_bytes():
    try:
        return int(pltpu.get_tpu_info().vmem_capacity_bytes)
    except Exception:
        return 64 * 1024 * 1024       # conservative fallback: smallest (v7x) VMEM


def outlier_discounting_loss(pred, labels, gamma=2.0, alpha=0.25):
    """pred: (N, C) float32/bfloat16 logits, labels: (N,) int class ids -> scalar."""
    n, c = pred.shape
    labels = labels.astype(jnp.int32)
    gamma = float(gamma)
    alpha = float(alpha)

    if n <= 1:
        # torch branch: no quantile / no discount for a single sample
        p32 = pred.astype(jnp.float32)
        onehot = jax.nn.one_hot(labels, c, dtype=jnp.float32)
        ce = jax.nn.logsumexp(p32, axis=-1) - jnp.sum(p32 * onehot, axis=-1)
        pt = jnp.exp(-ce)
        return jnp.mean(alpha * (1.0 - pt) ** gamma * ce)

    # --- generation-aware VMEM budgets ---------------------------------------
    vmem_cap = _physical_vmem_bytes()
    big_vmem = vmem_cap >= 100 * 1024 * 1024                 # v5e / v6e (128 MiB VMEM)
    hard_cap = (100 if big_vmem else 56) * 1024 * 1024       # stay under physical VMEM

    def vmem_limit(nbytes):
        return int(min(hard_cap, max(32 * 1024 * 1024, nbytes)))

    # --- pass-1 batch tiling --------------------------------------------------
    itemsize = pred.dtype.itemsize
    tile_budget = (24 if big_vmem else 8) * 1024 * 1024
    max_tile = max(128, ((tile_budget // (c * itemsize)) // 128) * 128)
    tile_n = min(2048, max_tile)               # 1-2 MiB tiles for small C -> near roofline
    n_r8 = _round_up(n, 8)
    if n_r8 <= tile_n:
        tile_n = n_r8                          # single tile for small batches
    n_pad = _round_up(n, tile_n)
    num_tiles = n_pad // tile_n
    # TODO(synk): for very large C (tens of thousands of classes) add an
    # 'arbitrary' grid axis over C with online max/log-sum-exp accumulation so
    # tile_n never has to shrink below 128 rows.

    pred_p = pred if n_pad == n else jnp.pad(pred, ((0, n_pad - n), (0, 0)))
    labels_p = labels if n_pad == n else jnp.pad(labels, (0, n_pad - n))
    labels2d = labels_p.reshape(n_pad, 1)

    # --- pass 1: per-sample CE / pt, pipelined over batch tiles ---------------
    ce_col, pt_col = pl.pallas_call(
        _ce_kernel,
        grid=(num_tiles,),
        in_specs=[
            pl.BlockSpec((tile_n, c), lambda i: (i, 0)),
            pl.BlockSpec((tile_n, 1), lambda i: (i, 0)),
        ],
        out_specs=(
            pl.BlockSpec((tile_n, 1), lambda i: (i, 0)),
            pl.BlockSpec((tile_n, 1), lambda i: (i, 0)),
        ),
        out_shape=(
            jax.ShapeDtypeStruct((n_pad, 1), jnp.float32),
            jax.ShapeDtypeStruct((n_pad, 1), jnp.float32),
        ),
        compiler_params=pltpu.CompilerParams(
            dimension_semantics=("parallel",),
            vmem_limit_bytes=vmem_limit(
                2 * tile_n * c * itemsize + 8 * tile_n * c + (2 << 20)),
        ),
    )(pred_p, labels2d)

    # Lane-major views for pass 2: reshaping a contiguous (n_pad, 1) column to
    # (1, n_pad) is free layout plumbing at the XLA level.  Pass 2 gets full
    # lane-width vectors AND the original column, so it never transposes.
    ce_row = ce_col.reshape(1, n_pad)
    pt_row = pt_col.reshape(1, n_pad)

    # pass-2 VMEM estimate: bool NxN compare matrix + bf16 copy (+ slack)
    pass2_bytes = 3 * n_pad * n_pad + (8 << 20)
    if pass2_bytes > hard_cap:
        # TODO(synk): tiled rank accumulation (grid over i-tiles, "parallel")
        # so the NxN matrix never has to fit VMEM at once on v7x.
        raise NotImplementedError(
            f"OutlierDiscountingLoss pass 2 needs ~{pass2_bytes >> 20} MiB of VMEM "
            f"for batch {n}; tiled rank accumulation is not implemented yet.")

    # quantile position in double precision (matches torch.quantile)
    pos = 0.7 * (n - 1)
    lo = math.floor(pos)
    hi = math.ceil(pos)
    frac = pos - lo

    kernel = functools.partial(
        _quantile_loss_kernel, n=n, lo=float(lo), hi=float(hi),
        frac=float(frac), gamma=gamma, alpha=alpha)
    out = pl.pallas_call(
        kernel,
        out_shape=jax.ShapeDtypeStruct((1, 1), jnp.float32),
        in_specs=[
            pl.BlockSpec(memory_space=pltpu.MemorySpace.VMEM),
            pl.BlockSpec(memory_space=pltpu.MemorySpace.VMEM),
            pl.BlockSpec(memory_space=pltpu.MemorySpace.VMEM),
        ],
        out_specs=pl.BlockSpec(memory_space=pltpu.MemorySpace.VMEM),
        compiler_params=pltpu.CompilerParams(
            vmem_limit_bytes=vmem_limit(pass2_bytes),
        ),
    )(ce_row, pt_row, ce_col)
    return out[0, 0]


# --------------------------------------------------------------------------
# Pure-JAX reference mirroring the PyTorch forward.
# --------------------------------------------------------------------------
def _reference(pred, labels, gamma=2.0, alpha=0.25):
    c = pred.shape[-1]
    p32 = pred.astype(jnp.float32)
    onehot = jax.nn.one_hot(labels, c, dtype=jnp.float32)
    ce = jax.nn.logsumexp(p32, axis=-1) - jnp.sum(p32 * onehot, axis=-1)
    pt = jnp.exp(-ce)
    focal = alpha * (1.0 - pt) ** gamma
    thr = jnp.quantile(ce, 0.7)
    discount = 1.0 - 0.5 * (ce > thr).astype(jnp.float32)
    return jnp.mean(focal * ce * discount)


if __name__ == "__main__":
    key = jax.random.PRNGKey(0)
    k1, k2, k3, k4 = jax.random.split(key, 4)

    # primary demo: batch of 8 samples, 128 classes (lane-aligned)
    N, C = 8, 128
    pred = jax.random.normal(k1, (N, C), dtype=jnp.float32) * 2.0
    labels = jax.random.randint(k2, (N,), 0, C, dtype=jnp.int32)
    loss = jax.block_until_ready(outlier_discounting_loss(pred, labels))
    ref = _reference(pred, labels)
    assert jnp.allclose(loss, ref, rtol=1e-4, atol=1e-5), (loss, ref)

    # extra check: odd batch / class counts exercise the padding + mask path
    N2, C2 = 37, 40
    pred2 = jax.random.normal(k3, (N2, C2), dtype=jnp.float32) * 1.5
    labels2 = jax.random.randint(k4, (N2,), 0, C2, dtype=jnp.int32)
    loss2 = jax.block_until_ready(outlier_discounting_loss(pred2, labels2))
    ref2 = _reference(pred2, labels2)
    assert jnp.allclose(loss2, ref2, rtol=1e-4, atol=1e-5), (loss2, ref2)

    print("KERNEL_OK")
</pallas_src>

<mosaic_0001>
module attributes {stable_mosaic.version = 11 : i64} {
  func.func @_ce_kernel(%arg0: i32, %arg1: memref<8x128xf32, #tpu.memory_space<vmem>>, %arg2: memref<8x1xi32, #tpu.memory_space<vmem>>, %arg3: memref<8x1xf32, #tpu.memory_space<vmem>>, %arg4: memref<8x1xf32, #tpu.memory_space<vmem>>) attributes {dimension_semantics = [#tpu.dimension_semantics<parallel>], iteration_bounds = array<i64: 1>, scalar_prefetch = 0 : i64, scratch_operands = 0 : i64, tpu.core_type = #tpu.core_type<tc>, window_params = [{transform_indices = @transform_0, window_bounds = array<i64: 8, 128>}, {transform_indices = @transform_1, window_bounds = array<i64: 8, 1>}, {transform_indices = @transform_2, window_bounds = array<i64: 8, 1>}, {transform_indices = @transform_3, window_bounds = array<i64: 8, 1>}]} {
    %c0 = arith.constant 0 : index
    %c0_0 = arith.constant 0 : index
    %0 = vector.load %arg1[%c0, %c0_0] : memref<8x128xf32, #tpu.memory_space<vmem>>, vector<8x128xf32>
    %c0_1 = arith.constant 0 : index
    %c0_2 = arith.constant 0 : index
    %1 = vector.load %arg2[%c0_1, %c0_2] : memref<8x1xi32, #tpu.memory_space<vmem>>, vector<8x1xi32>
    %cst = arith.constant dense<0xFF800000> : vector<8xf32>
    %2 = vector.multi_reduction <maximumf>, %0, %cst [1] : vector<8x128xf32> to vector<8xf32>
    %3 = vector.shape_cast %2 : vector<8xf32> to vector<8x1xf32>
    %4 = vector.broadcast %3 : vector<8x1xf32> to vector<8x128xf32>
    %5 = arith.subf %0, %4 : vector<8x128xf32>
    %6 = math.exp %5 : vector<8x128xf32>
    %cst_3 = arith.constant dense<0.000000e+00> : vector<8xf32>
    %7 = vector.multi_reduction <add>, %6, %cst_3 [1] : vector<8x128xf32> to vector<8xf32>
    %8 = vector.shape_cast %7 : vector<8xf32> to vector<8x1xf32>
    %9 = tpu.iota {dimensions = array<i32: 1>} : vector<8x128xi32>
    %10 = vector.broadcast %1 : vector<8x1xi32> to vector<8x128xi32>
    %11 = arith.cmpi eq, %9, %10 : vector<8x128xi32>
    %cst_4 = arith.constant 0.000000e+00 : f32
    %12 = vector.broadcast %cst_4 : f32 to vector<8x128xf32>
    %13 = arith.select %11, %0, %12 : vector<8x128xi1>, vector<8x128xf32>
    %cst_5 = arith.constant dense<0.000000e+00> : vector<8xf32>
    %14 = vector.multi_reduction <add>, %13, %cst_5 [1] : vector<8x128xf32> to vector<8xf32>
    %15 = vector.shape_cast %14 : vector<8xf32> to vector<8x1xf32>
    %16 = math.log %8 : vector<8x1xf32>
    %17 = arith.addf %3, %16 : vector<8x1xf32>
    %18 = arith.subf %17, %15 : vector<8x1xf32>
    %c0_6 = arith.constant 0 : index
    %c0_7 = arith.constant 0 : index
    %19 = vector.load %arg3[%c0_6, %c0_7] : memref<8x1xf32, #tpu.memory_space<vmem>>, vector<8x1xf32>
    tpu.vector_store %arg3[%c0_6, %c0_7], %18 {strides = array<i32>} : memref<8x1xf32, #tpu.memory_space<vmem>>, vector<8x1xf32>,
    %20 = arith.subf %15, %3 : vector<8x1xf32>
    %21 = math.exp %20 : vector<8x1xf32>
    %22 = arith.divf %21, %8 : vector<8x1xf32>
    %c0_8 = arith.constant 0 : index
    %c0_9 = arith.constant 0 : index
    %23 = vector.load %arg4[%c0_8, %c0_9] : memref<8x1xf32, #tpu.memory_space<vmem>>, vector<8x1xf32>
    tpu.vector_store %arg4[%c0_8, %c0_9], %22 {strides = array<i32>} : memref<8x1xf32, #tpu.memory_space<vmem>>, vector<8x1xf32>,
    return
  }
  func.func @transform_0(%arg0: i32) -> (i32, i32) {
    %c0_i32 = arith.constant 0 : i32
    %c0_i32_0 = arith.constant 0 : i32
    return %arg0, %c0_i32 : i32, i32
  }
  func.func @transform_1(%arg0: i32) -> (i32, i32) {
    %c0_i32 = arith.constant 0 : i32
    %c0_i32_0 = arith.constant 0 : i32
    return %arg0, %c0_i32 : i32, i32
  }
  func.func @transform_2(%arg0: i32) -> (i32, i32) {
    %c0_i32 = arith.constant 0 : i32
    %c0_i32_0 = arith.constant 0 : i32
    return %arg0, %c0_i32 : i32, i32
  }
  func.func @transform_3(%arg0: i32) -> (i32, i32) {
    %c0_i32 = arith.constant 0 : i32
    %c0_i32_0 = arith.constant 0 : i32
    return %arg0, %c0_i32 : i32, i32
  }
}

</mosaic_0001>

<bundles_post_ra>
// kernel: tpu_custom_call.1
= control target key start
LH: loop header
LB: loop body
LE: loop exit
PB: predicated region body
PF: predicated region fallthrough
CT: control target
= control target key end

     0   :  { %v61_v1 = vmov 0   ;;  %v22_v6 = vlaneseq  ;;  %vm35_vm1 = vcmask 7168   ;;  %s94_s0 = inlined_call_operand.vmem [shape: f32[8,128], index: 0, kind: input, shape index: {}]   ;;  %s95_s1 = inlined_call_operand.vmem [shape: s32[8,1], index: 1, kind: input, shape index: {}]   ;;  %s96_s2 = inlined_call_operand.vmem [shape: f32[8,1], index: 2, kind: output, shape index: {0}]   ;;  %s97_s3 = inlined_call_operand.vmem [shape: f32[8,1], index: 3, kind: output, shape index: {1}]  }
   0x1   :  { %v13_v0 = vld [vmem:[%s94_s0] sm:$0xff]  ;;  %52 = vset.pattern.permute.xlu0 %v61_v1 }
   0x2   :  { %15 = vmax.xlane.f32.xlu0 %v13_v0  ;;  %v14_v2 = vld [vmem:[%s95_s1] sm:$0xff]  ;;  %v23_v7 = vand.u32 127, %v22_v6 }
  0x18   :  { %25 = vperm.xlu0 %52, %v14_v2  }
  0x8b   :  { %v16_v3 = vpop.xlane.xlu0 %15 }
  0x8c   :  { %v17_v4 = vsub.f32 %v13_v0, %v16_v3 }
  0x8e   :  { %v18_v5 = vmul.f32 1.442695, %v17_v4 }
  0x90   :  { %53 = vpow2.f32 %v18_v5 }
  0x93   :  { %v26_v8 = vpop.permute.xlu0 %25 }
  0x94   :  { %vm27_vm0 = vcmp.eq.s32.totalorder %v23_v7, %v26_v8 }
  0x95   :  { %v28_v10 = vsel %vm27_vm0, %v13_v0, 0.0 }
  0x9d   :  { %v54_v9 = vpop.eup %53 }
  0x9e   :  { %20 = vadd.xlane.f32.xlu1 %v54_v9 }
  0xa2   :  { %29 = vadd.xlane.f32.xlu1 %v28_v10 }
 0x127   :  { %v21_v11 = vpop.xlane.xlu1 %20 }
 0x128   :  { %55 = vlog2.f32 %v21_v11 }
 0x129   :  { %57 = vrcp.f32 %v21_v11 }
 0x12b   :  { %v30_v12 = vpop.xlane.xlu1 %29 }
 0x12c   :  { %v37_v13 = vsub.f32 %v30_v12, %v16_v3 }
 0x12e   :  { %v38_v14 = vmul.f32 1.442695, %v37_v13 }
 0x130   :  { %59 = vpow2.f32 %v38_v14 }
 0x135   :  { %v56_v15 = vpop.eup %55 }
 0x136   :  { %v32_v16 = vmul.f32 0.6931472, %v56_v15  ;;  %v58_v19 = vpop.eup %57 }
 0x138   :  { %v33_v17 = vadd.f32 %v32_v16, %v16_v3 }
 0x13a   :  { %v34_v18 = vsub.f32 %v33_v17, %v30_v12 }
 0x13c   :  { %36 = vst.msk [vmem:[%s96_s2] sm:$0xff] %vm35_vm1, %v34_v18 }
 0x13d   :  { %v60_v20 = vpop.eup %59 }
 0x13e   :  { %v41_v21 = vmul.f32 %v60_v20, %v58_v19 }
 0x140   :  { %42 = vst.msk [vmem:[%s97_s3] sm:$0xff] %vm35_vm1, %v41_v21 }

</bundles_post_ra>
